<compile_context>
chip_gen: v5e
topology: v5e:2x2
jax: 0.10.0
libtpu: 0.0.40
codegen_flags: <defaults>
</compile_context>

<pallas_src>
import functools

import jax
import jax.numpy as jnp
import numpy as np
from jax.experimental import pallas as pl
from jax.experimental.pallas import tpu as pltpu


def _fused_kernel(gbias_ref, wcomb_ref, wbig_ref, bbig_ref, out_ref, h_scr,
                  *, T, B, hidden):
    """T-step GRU recurrence (one MXU push / step) + fused spatial expansion."""
    h2, h3 = 2 * hidden, 3 * hidden
    wcomb = wcomb_ref[...]                                   # (hidden, 4h)

    h = jnp.zeros((B, hidden), jnp.float32)
    for t in range(T):                                       # static, small T
        # One fused gate matmul: columns [0:2h] = (Wfold+Whh)_rz,
        # [2h:3h] = Wfold_n, [3h:4h] = Whh_n.  Biases are pre-folded in gbias.
        g = jnp.dot(h, wcomb, preferred_element_type=jnp.float32) + gbias_ref[:, t, :]
        rz = jax.nn.sigmoid(g[:, :h2])                       # one EUP slab for r|z
        r = rz[:, :hidden]
        z = rz[:, hidden:]
        n = jnp.tanh(g[:, h2:h3] + r * g[:, h3:])
        h = (1.0 - z) * n + z * h
        h_scr[:, t, :] = h                                   # stays in VMEM

    # Spatial expansion after the loop, batched over T, output in B-major
    # order: feats[b, t, c*HW+p] = h_t[b] @ Wbig[:, c*HW+p] + conv_b[c].
    wbig = wbig_ref[...]                                     # (hidden, N)
    bbig = bbig_ref[...]                                     # (1, N)
    for b in range(B):                                       # static, small B
        out_ref[b] = jnp.dot(h_scr[b], wbig,
                             preferred_element_type=jnp.float32) + bbig


@functools.partial(jax.jit, static_argnames=("hidden_ch",))
def conv_gru_predictor(f0, actions, params, *, hidden_ch):
    """f0: (B, ch, H, W), actions: (B, T, act_dim) -> (B, T, ch, H, W)."""
    B, ch, H, W = f0.shape
    _, T, act_dim = actions.shape
    HW = H * W
    N = ch * HW
    hd = hidden_ch
    h2, h3, h4 = 2 * hd, 3 * hd, 4 * hd
    f32 = jnp.float32

    f0 = f0.astype(f32)
    actions = actions.astype(f32)

    # ---- host/trace-time weight folding (compiled into this jit) ---------
    # Static {0,1} validity masks of the 3x3 zero-padded conv taps (numpy).
    mask = np.zeros((3, 3, H, W), np.float32)
    for ki in range(3):
        rv = (np.arange(H) + ki - 1 >= 0) & (np.arange(H) + ki - 1 < H)
        for kj in range(3):
            cv = (np.arange(W) + kj - 1 >= 0) & (np.arange(W) + kj - 1 < W)
            mask[ki, kj] = rv[:, None].astype(np.float32) * cv[None, :].astype(np.float32)
    mask9 = jnp.asarray(mask.reshape(9, HW))                         # (9, HW)

    wc = params["conv_w"].astype(f32).reshape(ch, hd, 9)
    bc = params["conv_b"].astype(f32)                                # (ch,)
    # Wbig[h, c*HW+p] = sum_k wc[c, h, k] * mask9[k, p]
    wbig = jnp.einsum("chk,kp->hcp", wc, mask9).reshape(hd, N)       # (hidden, N)
    wmean = wbig.reshape(hd, ch, HW).mean(axis=-1)                   # (hidden, ch)
    bbig = jnp.broadcast_to(bc[:, None], (ch, HW)).reshape(1, N)     # (1, N)

    w_ih = params["gru_w_ih"].astype(f32)                            # (3h, ch+2)
    wih_feat = w_ih[:, :ch].T                                        # (ch, 3h)
    wih_flow = w_ih[:, ch:].T                                        # (2, 3h)
    b_ih = params["gru_b_ih"].astype(f32)                            # (3h,)
    whh_t = params["gru_w_hh"].astype(f32).T                         # (hidden, 3h)
    b_hh = params["gru_b_hh"].astype(f32)                            # (3h,)
    wa_t = params["act2flow_w"].astype(f32).T                        # (act_dim, 2)
    ba = params["act2flow_b"].astype(f32)                            # (2,)

    # Fold Wmean into the GRU input weights, then merge with Whh into one
    # (hidden, 4h) matrix: gi_rz + gh_rz are summed, gi_n / gh_n kept apart.
    wfold = wmean @ wih_feat                                         # (hidden, 3h)
    wcomb = jnp.concatenate(
        [wfold[:, :h2] + whh_t[:, :h2], wfold[:, h2:h3], whh_t[:, h2:h3]],
        axis=1)                                                      # (hidden, 4h)

    # Per-timestep bias tensor (action + f0/conv_b + b_ih/b_hh), off the
    # serial path.  At t=0 the feature term comes from mean_p(f0); for t>=1
    # it is the constant conv_b contribution (the h-dependent part is wfold).
    flow = actions @ wa_t + ba                                       # (B, T, 2)
    gi_const = jnp.einsum("btf,fg->btg", flow, wih_flow) + b_ih      # (B, T, 3h)
    fm0 = f0.reshape(B, ch, HW).mean(-1)                             # (B, ch)
    extra0 = (fm0 @ wih_feat)[:, None, :]                            # (B, 1, 3h)
    extra_rest = jnp.broadcast_to((bc @ wih_feat)[None, None, :], (B, T - 1, h3))
    gi_const = gi_const + jnp.concatenate([extra0, extra_rest], axis=1)
    gbias = jnp.concatenate(
        [gi_const[:, :, :h2] + b_hh[:h2],
         gi_const[:, :, h2:h3],
         jnp.broadcast_to(b_hh[h2:h3][None, None, :], (B, T, hd))],
        axis=-1)                                                     # (B, T, 4h)

    # ---- single fused Pallas call ----------------------------------------
    kern = functools.partial(_fused_kernel, T=T, B=B, hidden=hd)
    feats = pl.pallas_call(
        kern,
        out_shape=jax.ShapeDtypeStruct((B, T, N), f32),
        grid=(1,),
        in_specs=[
            pl.BlockSpec((B, T, h4), lambda i: (0, 0, 0)),           # gbias
            pl.BlockSpec((hd, h4), lambda i: (0, 0)),                # Wcomb
            pl.BlockSpec((hd, N), lambda i: (0, 0)),                 # Wbig
            pl.BlockSpec((1, N), lambda i: (0, 0)),                  # conv bias row
        ],
        out_specs=pl.BlockSpec((B, T, N), lambda i: (0, 0, 0)),
        scratch_shapes=[pltpu.VMEM((B, T, hd), f32)],
        compiler_params=pltpu.CompilerParams(
            dimension_semantics=("arbitrary",)),
    )(gbias, wcomb, wbig, bbig)

    return feats.reshape(B, T, ch, H, W)                             # free view


def reference(f0, actions, params, hidden_ch):
    """Pure-JAX reference mirroring the PyTorch forward exactly."""
    B, ch, H, W = f0.shape
    T = actions.shape[1]
    wa, ba = params["act2flow_w"], params["act2flow_b"]
    w_ih, w_hh = params["gru_w_ih"], params["gru_w_hh"]
    b_ih, b_hh = params["gru_b_ih"], params["gru_b_hh"]
    wc, bc = params["conv_w"], params["conv_b"]
    h = jnp.zeros((B, hidden_ch), jnp.float32)
    f = f0
    feats = []
    for t in range(T):
        flow = actions[:, t] @ wa.T + ba
        flow_map = jnp.broadcast_to(flow[:, :, None, None], (B, 2, H, W))
        z = jnp.concatenate([f, flow_map], axis=1)
        x = z.reshape(B, ch + 2, H * W).mean(-1)
        gi = x @ w_ih.T + b_ih
        gh = h @ w_hh.T + b_hh
        r = jax.nn.sigmoid(gi[:, :hidden_ch] + gh[:, :hidden_ch])
        zg = jax.nn.sigmoid(gi[:, hidden_ch:2 * hidden_ch] + gh[:, hidden_ch:2 * hidden_ch])
        n = jnp.tanh(gi[:, 2 * hidden_ch:] + r * gh[:, 2 * hidden_ch:])
        h = (1.0 - zg) * n + zg * h
        hmap = jnp.broadcast_to(h[:, :, None, None], (B, hidden_ch, H, W))
        f = jax.lax.conv_general_dilated(
            hmap, wc, window_strides=(1, 1), padding=((1, 1), (1, 1)),
            dimension_numbers=("NCHW", "OIHW", "NCHW")) + bc[None, :, None, None]
        feats.append(f)
    return jnp.stack(feats, axis=1)


if __name__ == "__main__":
    B, ch, act_dim, hidden_ch, H, T = 2, 4, 2, 32, 16, 6
    W = H

    key = jax.random.PRNGKey(0)
    ks = jax.random.split(key, 12)
    s = 0.1
    params = {
        "act2flow_w": s * jax.random.normal(ks[0], (2, act_dim), jnp.float32),
        "act2flow_b": s * jax.random.normal(ks[1], (2,), jnp.float32),
        "gru_w_ih": s * jax.random.normal(ks[2], (3 * hidden_ch, ch + 2), jnp.float32),
        "gru_w_hh": s * jax.random.normal(ks[3], (3 * hidden_ch, hidden_ch), jnp.float32),
        "gru_b_ih": s * jax.random.normal(ks[4], (3 * hidden_ch,), jnp.float32),
        "gru_b_hh": s * jax.random.normal(ks[5], (3 * hidden_ch,), jnp.float32),
        "conv_w": s * jax.random.normal(ks[6], (ch, hidden_ch, 3, 3), jnp.float32),
        "conv_b": s * jax.random.normal(ks[7], (ch,), jnp.float32),
    }
    f0 = jax.random.normal(ks[8], (B, ch, H, W), jnp.float32)
    actions = jax.random.normal(ks[9], (B, T, act_dim), jnp.float32)

    out = conv_gru_predictor(f0, actions, params, hidden_ch=hidden_ch)
    out = jax.block_until_ready(out)

    ref = reference(f0, actions, params, hidden_ch)
    assert out.shape == (B, T, ch, H, W)
    np.testing.assert_allclose(np.asarray(out), np.asarray(ref), atol=2e-3, rtol=2e-3)

    print("KERNEL_OK")
</pallas_src>

<mosaic_0001>
module attributes {stable_mosaic.version = 11 : i64} {
  func.func @_fused_kernel(%arg0: i32, %arg1: memref<2x6x128xf32, #tpu.memory_space<vmem>>, %arg2: memref<32x128xf32, #tpu.memory_space<vmem>>, %arg3: memref<32x1024xf32, #tpu.memory_space<vmem>>, %arg4: memref<1x1024xf32, #tpu.memory_space<vmem>>, %arg5: memref<2x6x1024xf32, #tpu.memory_space<vmem>>, %arg6: memref<2x6x32xf32, #tpu.memory_space<vmem>>) attributes {dimension_semantics = [#tpu.dimension_semantics<arbitrary>], iteration_bounds = array<i64: 1>, scalar_prefetch = 0 : i64, scratch_operands = 1 : i64, tpu.core_type = #tpu.core_type<tc>, window_params = [{pipeline_mode = #tpu.pipeline_mode<synchronous>, transform_indices = @transform_0, window_bounds = array<i64: 2, 6, 128>}, {pipeline_mode = #tpu.pipeline_mode<synchronous>, transform_indices = @transform_1, window_bounds = array<i64: 32, 128>}, {pipeline_mode = #tpu.pipeline_mode<synchronous>, transform_indices = @transform_2, window_bounds = array<i64: 32, 1024>}, {pipeline_mode = #tpu.pipeline_mode<synchronous>, transform_indices = @transform_3, window_bounds = array<i64: 1, 1024>}, {pipeline_mode = #tpu.pipeline_mode<synchronous>, transform_indices = @transform_4, window_bounds = array<i64: 2, 6, 1024>}]} {
    %c0 = arith.constant 0 : index
    %c0_0 = arith.constant 0 : index
    %0 = vector.load %arg2[%c0, %c0_0] : memref<32x128xf32, #tpu.memory_space<vmem>>, vector<32x128xf32>
    %cst = arith.constant 0.000000e+00 : f32
    %1 = vector.broadcast %cst : f32 to vector<2x32xf32>
    %cst_1 = arith.constant dense<0.000000e+00> : vector<2x128xf32>
    %2 = tpu.matmul %1, %0, %cst_1 {dimension_numbers = #tpu.dot_dimension_numbers<[1], [0], [0], [1], [0, 0, 1, 1], [], []>} : vector<2x32xf32>, vector<32x128xf32>, vector<2x128xf32> -> vector<2x128xf32>
    %c0_2 = arith.constant 0 : index
    %c0_3 = arith.constant 0 : index
    %c0_4 = arith.constant 0 : index
    %3 = vector.load %arg1[%c0_2, %c0_3, %c0_4] : memref<2x6x128xf32, #tpu.memory_space<vmem>>, vector<2x1x128xf32>
    %4 = vector.shape_cast %3 : vector<2x1x128xf32> to vector<2x128xf32>
    %5 = arith.addf %2, %4 : vector<2x128xf32>
    %6 = vector.extract_strided_slice %5 {offsets = [0, 0], sizes = [2, 64], strides = [1, 1]} : vector<2x128xf32> to vector<2x64xf32>
    %7 = arith.negf %6 : vector<2x64xf32>
    %8 = math.exp %7 : vector<2x64xf32>
    %cst_5 = arith.constant 1.000000e+00 : f32
    %9 = vector.broadcast %cst_5 : f32 to vector<2x64xf32>
    %10 = arith.addf %9, %8 : vector<2x64xf32>
    %11 = arith.divf %9, %10 : vector<2x64xf32>
    %12 = vector.extract_strided_slice %11 {offsets = [0, 0], sizes = [2, 32], strides = [1, 1]} : vector<2x64xf32> to vector<2x32xf32>
    %13 = vector.extract_strided_slice %11 {offsets = [0, 32], sizes = [2, 32], strides = [1, 1]} : vector<2x64xf32> to vector<2x32xf32>
    %14 = vector.extract_strided_slice %5 {offsets = [0, 64], sizes = [2, 32], strides = [1, 1]} : vector<2x128xf32> to vector<2x32xf32>
    %15 = vector.extract_strided_slice %5 {offsets = [0, 96], sizes = [2, 32], strides = [1, 1]} : vector<2x128xf32> to vector<2x32xf32>
    %16 = arith.mulf %12, %15 : vector<2x32xf32>
    %17 = arith.addf %14, %16 : vector<2x32xf32>
    %18 = math.tanh %17 : vector<2x32xf32>
    %cst_6 = arith.constant 1.000000e+00 : f32
    %19 = vector.broadcast %cst_6 : f32 to vector<2x32xf32>
    %20 = arith.subf %19, %13 : vector<2x32xf32>
    %21 = arith.mulf %20, %18 : vector<2x32xf32>
    %22 = arith.mulf %13, %1 : vector<2x32xf32>
    %23 = arith.addf %21, %22 : vector<2x32xf32>
    %c0_7 = arith.constant 0 : index
    %c0_8 = arith.constant 0 : index
    %c0_9 = arith.constant 0 : index
    %24 = vector.load %arg6[%c0_7, %c0_8, %c0_9] : memref<2x6x32xf32, #tpu.memory_space<vmem>>, vector<2x1x32xf32>
    %25 = vector.shape_cast %24 : vector<2x1x32xf32> to vector<2x32xf32>
    %26 = vector.shape_cast %23 : vector<2x32xf32> to vector<2x1x32xf32>
    tpu.vector_store %arg6[%c0_7, %c0_8, %c0_9], %26 {strides = array<i32>} : memref<2x6x32xf32, #tpu.memory_space<vmem>>, vector<2x1x32xf32>,
    %cst_10 = arith.constant dense<0.000000e+00> : vector<2x128xf32>
    %27 = tpu.matmul %23, %0, %cst_10 {dimension_numbers = #tpu.dot_dimension_numbers<[1], [0], [0], [1], [0, 0, 1, 1], [], []>} : vector<2x32xf32>, vector<32x128xf32>, vector<2x128xf32> -> vector<2x128xf32>
    %c0_11 = arith.constant 0 : index
    %c1 = arith.constant 1 : index
    %c0_12 = arith.constant 0 : index
    %28 = vector.load %arg1[%c0_11, %c1, %c0_12] : memref<2x6x128xf32, #tpu.memory_space<vmem>>, vector<2x1x128xf32>
    %29 = vector.shape_cast %28 : vector<2x1x128xf32> to vector<2x128xf32>
    %30 = arith.addf %27, %29 : vector<2x128xf32>
    %31 = vector.extract_strided_slice %30 {offsets = [0, 0], sizes = [2, 64], strides = [1, 1]} : vector<2x128xf32> to vector<2x64xf32>
    %32 = arith.negf %31 : vector<2x64xf32>
    %33 = math.exp %32 : vector<2x64xf32>
    %cst_13 = arith.constant 1.000000e+00 : f32
    %34 = vector.broadcast %cst_13 : f32 to vector<2x64xf32>
    %35 = arith.addf %34, %33 : vector<2x64xf32>
    %36 = arith.divf %34, %35 : vector<2x64xf32>
    %37 = vector.extract_strided_slice %36 {offsets = [0, 0], sizes = [2, 32], strides = [1, 1]} : vector<2x64xf32> to vector<2x32xf32>
    %38 = vector.extract_strided_slice %36 {offsets = [0, 32], sizes = [2, 32], strides = [1, 1]} : vector<2x64xf32> to vector<2x32xf32>
    %39 = vector.extract_strided_slice %30 {offsets = [0, 64], sizes = [2, 32], strides = [1, 1]} : vector<2x128xf32> to vector<2x32xf32>
    %40 = vector.extract_strided_slice %30 {offsets = [0, 96], sizes = [2, 32], strides = [1, 1]} : vector<2x128xf32> to vector<2x32xf32>
    %41 = arith.mulf %37, %40 : vector<2x32xf32>
    %42 = arith.addf %39, %41 : vector<2x32xf32>
    %43 = math.tanh %42 : vector<2x32xf32>
    %cst_14 = arith.constant 1.000000e+00 : f32
    %44 = vector.broadcast %cst_14 : f32 to vector<2x32xf32>
    %45 = arith.subf %44, %38 : vector<2x32xf32>
    %46 = arith.mulf %45, %43 : vector<2x32xf32>
    %47 = arith.mulf %38, %23 : vector<2x32xf32>
    %48 = arith.addf %46, %47 : vector<2x32xf32>
    %c0_15 = arith.constant 0 : index
    %c1_16 = arith.constant 1 : index
    %c0_17 = arith.constant 0 : index
    %49 = vector.load %arg6[%c0_15, %c1_16, %c0_17] : memref<2x6x32xf32, #tpu.memory_space<vmem>>, vector<2x1x32xf32>
    %50 = vector.shape_cast %49 : vector<2x1x32xf32> to vector<2x32xf32>
    %51 = vector.shape_cast %48 : vector<2x32xf32> to vector<2x1x32xf32>
    tpu.vector_store %arg6[%c0_15, %c1_16, %c0_17], %51 {strides = array<i32>} : memref<2x6x32xf32, #tpu.memory_space<vmem>>, vector<2x1x32xf32>,
    %cst_18 = arith.constant dense<0.000000e+00> : vector<2x128xf32>
    %52 = tpu.matmul %48, %0, %cst_18 {dimension_numbers = #tpu.dot_dimension_numbers<[1], [0], [0], [1], [0, 0, 1, 1], [], []>} : vector<2x32xf32>, vector<32x128xf32>, vector<2x128xf32> -> vector<2x128xf32>
    %c0_19 = arith.constant 0 : index
    %c2 = arith.constant 2 : index
    %c0_20 = arith.constant 0 : index
    %53 = vector.load %arg1[%c0_19, %c2, %c0_20] : memref<2x6x128xf32, #tpu.memory_space<vmem>>, vector<2x1x128xf32>
    %54 = vector.shape_cast %53 : vector<2x1x128xf32> to vector<2x128xf32>
    %55 = arith.addf %52, %54 : vector<2x128xf32>
    %56 = vector.extract_strided_slice %55 {offsets = [0, 0], sizes = [2, 64], strides = [1, 1]} : vector<2x128xf32> to vector<2x64xf32>
    %57 = arith.negf %56 : vector<2x64xf32>
    %58 = math.exp %57 : vector<2x64xf32>
    %cst_21 = arith.constant 1.000000e+00 : f32
    %59 = vector.broadcast %cst_21 : f32 to vector<2x64xf32>
    %60 = arith.addf %59, %58 : vector<2x64xf32>
    %61 = arith.divf %59, %60 : vector<2x64xf32>
    %62 = vector.extract_strided_slice %61 {offsets = [0, 0], sizes = [2, 32], strides = [1, 1]} : vector<2x64xf32> to vector<2x32xf32>
    %63 = vector.extract_strided_slice %61 {offsets = [0, 32], sizes = [2, 32], strides = [1, 1]} : vector<2x64xf32> to vector<2x32xf32>
    %64 = vector.extract_strided_slice %55 {offsets = [0, 64], sizes = [2, 32], strides = [1, 1]} : vector<2x128xf32> to vector<2x32xf32>
    %65 = vector.extract_strided_slice %55 {offsets = [0, 96], sizes = [2, 32], strides = [1, 1]} : vector<2x128xf32> to vector<2x32xf32>
    %66 = arith.mulf %62, %65 : vector<2x32xf32>
    %67 = arith.addf %64, %66 : vector<2x32xf32>
    %68 = math.tanh %67 : vector<2x32xf32>
    %cst_22 = arith.constant 1.000000e+00 : f32
    %69 = vector.broadcast %cst_22 : f32 to vector<2x32xf32>
    %70 = arith.subf %69, %63 : vector<2x32xf32>
    %71 = arith.mulf %70, %68 : vector<2x32xf32>
    %72 = arith.mulf %63, %48 : vector<2x32xf32>
    %73 = arith.addf %71, %72 : vector<2x32xf32>
    %c0_23 = arith.constant 0 : index
    %c2_24 = arith.constant 2 : index
    %c0_25 = arith.constant 0 : index
    %74 = vector.load %arg6[%c0_23, %c2_24, %c0_25] : memref<2x6x32xf32, #tpu.memory_space<vmem>>, vector<2x1x32xf32>
    %75 = vector.shape_cast %74 : vector<2x1x32xf32> to vector<2x32xf32>
    %76 = vector.shape_cast %73 : vector<2x32xf32> to vector<2x1x32xf32>
    tpu.vector_store %arg6[%c0_23, %c2_24, %c0_25], %76 {strides = array<i32>} : memref<2x6x32xf32, #tpu.memory_space<vmem>>, vector<2x1x32xf32>,
    %cst_26 = arith.constant dense<0.000000e+00> : vector<2x128xf32>
    %77 = tpu.matmul %73, %0, %cst_26 {dimension_numbers = #tpu.dot_dimension_numbers<[1], [0], [0], [1], [0, 0, 1, 1], [], []>} : vector<2x32xf32>, vector<32x128xf32>, vector<2x128xf32> -> vector<2x128xf32>
    %c0_27 = arith.constant 0 : index
    %c3 = arith.constant 3 : index
    %c0_28 = arith.constant 0 : index
    %78 = vector.load %arg1[%c0_27, %c3, %c0_28] : memref<2x6x128xf32, #tpu.memory_space<vmem>>, vector<2x1x128xf32>
    %79 = vector.shape_cast %78 : vector<2x1x128xf32> to vector<2x128xf32>
    %80 = arith.addf %77, %79 : vector<2x128xf32>
    %81 = vector.extract_strided_slice %80 {offsets = [0, 0], sizes = [2, 64], strides = [1, 1]} : vector<2x128xf32> to vector<2x64xf32>
    %82 = arith.negf %81 : vector<2x64xf32>
    %83 = math.exp %82 : vector<2x64xf32>
    %cst_29 = arith.constant 1.000000e+00 : f32
    %84 = vector.broadcast %cst_29 : f32 to vector<2x64xf32>
    %85 = arith.addf %84, %83 : vector<2x64xf32>
    %86 = arith.divf %84, %85 : vector<2x64xf32>
    %87 = vector.extract_strided_slice %86 {offsets = [0, 0], sizes = [2, 32], strides = [1, 1]} : vector<2x64xf32> to vector<2x32xf32>
    %88 = vector.extract_strided_slice %86 {offsets = [0, 32], sizes = [2, 32], strides = [1, 1]} : vector<2x64xf32> to vector<2x32xf32>
    %89 = vector.extract_strided_slice %80 {offsets = [0, 64], sizes = [2, 32], strides = [1, 1]} : vector<2x128xf32> to vector<2x32xf32>
    %90 = vector.extract_strided_slice %80 {offsets = [0, 96], sizes = [2, 32], strides = [1, 1]} : vector<2x128xf32> to vector<2x32xf32>
    %91 = arith.mulf %87, %90 : vector<2x32xf32>
    %92 = arith.addf %89, %91 : vector<2x32xf32>
    %93 = math.tanh %92 : vector<2x32xf32>
    %cst_30 = arith.constant 1.000000e+00 : f32
    %94 = vector.broadcast %cst_30 : f32 to vector<2x32xf32>
    %95 = arith.subf %94, %88 : vector<2x32xf32>
    %96 = arith.mulf %95, %93 : vector<2x32xf32>
    %97 = arith.mulf %88, %73 : vector<2x32xf32>
    %98 = arith.addf %96, %97 : vector<2x32xf32>
    %c0_31 = arith.constant 0 : index
    %c3_32 = arith.constant 3 : index
    %c0_33 = arith.constant 0 : index
    %99 = vector.load %arg6[%c0_31, %c3_32, %c0_33] : memref<2x6x32xf32, #tpu.memory_space<vmem>>, vector<2x1x32xf32>
    %100 = vector.shape_cast %99 : vector<2x1x32xf32> to vector<2x32xf32>
    %101 = vector.shape_cast %98 : vector<2x32xf32> to vector<2x1x32xf32>
    tpu.vector_store %arg6[%c0_31, %c3_32, %c0_33], %101 {strides = array<i32>} : memref<2x6x32xf32, #tpu.memory_space<vmem>>, vector<2x1x32xf32>,
    %cst_34 = arith.constant dense<0.000000e+00> : vector<2x128xf32>
    %102 = tpu.matmul %98, %0, %cst_34 {dimension_numbers = #tpu.dot_dimension_numbers<[1], [0], [0], [1], [0, 0, 1, 1], [], []>} : vector<2x32xf32>, vector<32x128xf32>, vector<2x128xf32> -> vector<2x128xf32>
    %c0_35 = arith.constant 0 : index
    %c4 = arith.constant 4 : index
    %c0_36 = arith.constant 0 : index
    %103 = vector.load %arg1[%c0_35, %c4, %c0_36] : memref<2x6x128xf32, #tpu.memory_space<vmem>>, vector<2x1x128xf32>
    %104 = vector.shape_cast %103 : vector<2x1x128xf32> to vector<2x128xf32>
    %105 = arith.addf %102, %104 : vector<2x128xf32>
    %106 = vector.extract_strided_slice %105 {offsets = [0, 0], sizes = [2, 64], strides = [1, 1]} : vector<2x128xf32> to vector<2x64xf32>
    %107 = arith.negf %106 : vector<2x64xf32>
    %108 = math.exp %107 : vector<2x64xf32>
    %cst_37 = arith.constant 1.000000e+00 : f32
    %109 = vector.broadcast %cst_37 : f32 to vector<2x64xf32>
    %110 = arith.addf %109, %108 : vector<2x64xf32>
    %111 = arith.divf %109, %110 : vector<2x64xf32>
    %112 = vector.extract_strided_slice %111 {offsets = [0, 0], sizes = [2, 32], strides = [1, 1]} : vector<2x64xf32> to vector<2x32xf32>
    %113 = vector.extract_strided_slice %111 {offsets = [0, 32], sizes = [2, 32], strides = [1, 1]} : vector<2x64xf32> to vector<2x32xf32>
    %114 = vector.extract_strided_slice %105 {offsets = [0, 64], sizes = [2, 32], strides = [1, 1]} : vector<2x128xf32> to vector<2x32xf32>
    %115 = vector.extract_strided_slice %105 {offsets = [0, 96], sizes = [2, 32], strides = [1, 1]} : vector<2x128xf32> to vector<2x32xf32>
    %116 = arith.mulf %112, %115 : vector<2x32xf32>
    %117 = arith.addf %114, %116 : vector<2x32xf32>
    %118 = math.tanh %117 : vector<2x32xf32>
    %cst_38 = arith.constant 1.000000e+00 : f32
    %119 = vector.broadcast %cst_38 : f32 to vector<2x32xf32>
    %120 = arith.subf %119, %113 : vector<2x32xf32>
    %121 = arith.mulf %120, %118 : vector<2x32xf32>
    %122 = arith.mulf %113, %98 : vector<2x32xf32>
    %123 = arith.addf %121, %122 : vector<2x32xf32>
    %c0_39 = arith.constant 0 : index
    %c4_40 = arith.constant 4 : index
    %c0_41 = arith.constant 0 : index
    %124 = vector.load %arg6[%c0_39, %c4_40, %c0_41] : memref<2x6x32xf32, #tpu.memory_space<vmem>>, vector<2x1x32xf32>
    %125 = vector.shape_cast %124 : vector<2x1x32xf32> to vector<2x32xf32>
    %126 = vector.shape_cast %123 : vector<2x32xf32> to vector<2x1x32xf32>
    tpu.vector_store %arg6[%c0_39, %c4_40, %c0_41], %126 {strides = array<i32>} : memref<2x6x32xf32, #tpu.memory_space<vmem>>, vector<2x1x32xf32>,
    %cst_42 = arith.constant dense<0.000000e+00> : vector<2x128xf32>
    %127 = tpu.matmul %123, %0, %cst_42 {dimension_numbers = #tpu.dot_dimension_numbers<[1], [0], [0], [1], [0, 0, 1, 1], [], []>} : vector<2x32xf32>, vector<32x128xf32>, vector<2x128xf32> -> vector<2x128xf32>
    %c0_43 = arith.constant 0 : index
    %c5 = arith.constant 5 : index
    %c0_44 = arith.constant 0 : index
    %128 = vector.load %arg1[%c0_43, %c5, %c0_44] : memref<2x6x128xf32, #tpu.memory_space<vmem>>, vector<2x1x128xf32>
    %129 = vector.shape_cast %128 : vector<2x1x128xf32> to vector<2x128xf32>
    %130 = arith.addf %127, %129 : vector<2x128xf32>
    %131 = vector.extract_strided_slice %130 {offsets = [0, 0], sizes = [2, 64], strides = [1, 1]} : vector<2x128xf32> to vector<2x64xf32>
    %132 = arith.negf %131 : vector<2x64xf32>
    %133 = math.exp %132 : vector<2x64xf32>
    %cst_45 = arith.constant 1.000000e+00 : f32
    %134 = vector.broadcast %cst_45 : f32 to vector<2x64xf32>
    %135 = arith.addf %134, %133 : vector<2x64xf32>
    %136 = arith.divf %134, %135 : vector<2x64xf32>
    %137 = vector.extract_strided_slice %136 {offsets = [0, 0], sizes = [2, 32], strides = [1, 1]} : vector<2x64xf32> to vector<2x32xf32>
    %138 = vector.extract_strided_slice %136 {offsets = [0, 32], sizes = [2, 32], strides = [1, 1]} : vector<2x64xf32> to vector<2x32xf32>
    %139 = vector.extract_strided_slice %130 {offsets = [0, 64], sizes = [2, 32], strides = [1, 1]} : vector<2x128xf32> to vector<2x32xf32>
    %140 = vector.extract_strided_slice %130 {offsets = [0, 96], sizes = [2, 32], strides = [1, 1]} : vector<2x128xf32> to vector<2x32xf32>
    %141 = arith.mulf %137, %140 : vector<2x32xf32>
    %142 = arith.addf %139, %141 : vector<2x32xf32>
    %143 = math.tanh %142 : vector<2x32xf32>
    %cst_46 = arith.constant 1.000000e+00 : f32
    %144 = vector.broadcast %cst_46 : f32 to vector<2x32xf32>
    %145 = arith.subf %144, %138 : vector<2x32xf32>
    %146 = arith.mulf %145, %143 : vector<2x32xf32>
    %147 = arith.mulf %138, %123 : vector<2x32xf32>
    %148 = arith.addf %146, %147 : vector<2x32xf32>
    %c0_47 = arith.constant 0 : index
    %c5_48 = arith.constant 5 : index
    %c0_49 = arith.constant 0 : index
    %149 = vector.load %arg6[%c0_47, %c5_48, %c0_49] : memref<2x6x32xf32, #tpu.memory_space<vmem>>, vector<2x1x32xf32>
    %150 = vector.shape_cast %149 : vector<2x1x32xf32> to vector<2x32xf32>
    %151 = vector.shape_cast %148 : vector<2x32xf32> to vector<2x1x32xf32>
    tpu.vector_store %arg6[%c0_47, %c5_48, %c0_49], %151 {strides = array<i32>} : memref<2x6x32xf32, #tpu.memory_space<vmem>>, vector<2x1x32xf32>,
    %c0_50 = arith.constant 0 : index
    %c0_51 = arith.constant 0 : index
    %152 = vector.load %arg3[%c0_50, %c0_51] : memref<32x1024xf32, #tpu.memory_space<vmem>>, vector<32x1024xf32>
    %c0_52 = arith.constant 0 : index
    %c0_53 = arith.constant 0 : index
    %153 = vector.load %arg4[%c0_52, %c0_53] : memref<1x1024xf32, #tpu.memory_space<vmem>>, vector<1x1024xf32>
    %c0_54 = arith.constant 0 : index
    %c0_55 = arith.constant 0 : index
    %c0_56 = arith.constant 0 : index
    %154 = vector.load %arg6[%c0_54, %c0_55, %c0_56] : memref<2x6x32xf32, #tpu.memory_space<vmem>>, vector<1x6x32xf32>
    %155 = vector.shape_cast %154 : vector<1x6x32xf32> to vector<6x32xf32>
    %cst_57 = arith.constant dense<0.000000e+00> : vector<6x1024xf32>
    %156 = tpu.matmul %155, %152, %cst_57 {dimension_numbers = #tpu.dot_dimension_numbers<[1], [0], [0], [1], [0, 0, 1, 1], [], []>} : vector<6x32xf32>, vector<32x1024xf32>, vector<6x1024xf32> -> vector<6x1024xf32>
    %157 = vector.broadcast %153 : vector<1x1024xf32> to vector<6x1024xf32>
    %158 = arith.addf %156, %157 : vector<6x1024xf32>
    %c0_58 = arith.constant 0 : index
    %c0_59 = arith.constant 0 : index
    %c0_60 = arith.constant 0 : index
    %159 = vector.load %arg5[%c0_58, %c0_59, %c0_60] : memref<2x6x1024xf32, #tpu.memory_space<vmem>>, vector<1x6x1024xf32>
    %160 = vector.shape_cast %159 : vector<1x6x1024xf32> to vector<6x1024xf32>
    %161 = vector.shape_cast %158 : vector<6x1024xf32> to vector<1x6x1024xf32>
    tpu.vector_store %arg5[%c0_58, %c0_59, %c0_60], %161 {strides = array<i32>} : memref<2x6x1024xf32, #tpu.memory_space<vmem>>, vector<1x6x1024xf32>,
    %c1_61 = arith.constant 1 : index
    %c0_62 = arith.constant 0 : index
    %c0_63 = arith.constant 0 : index
    %162 = vector.load %arg6[%c1_61, %c0_62, %c0_63] : memref<2x6x32xf32, #tpu.memory_space<vmem>>, vector<1x6x32xf32>
    %163 = vector.shape_cast %162 : vector<1x6x32xf32> to vector<6x32xf32>
    %cst_64 = arith.constant dense<0.000000e+00> : vector<6x1024xf32>
    %164 = tpu.matmul %163, %152, %cst_64 {dimension_numbers = #tpu.dot_dimension_numbers<[1], [0], [0], [1], [0, 0, 1, 1], [], []>} : vector<6x32xf32>, vector<32x1024xf32>, vector<6x1024xf32> -> vector<6x1024xf32>
    %165 = vector.broadcast %153 : vector<1x1024xf32> to vector<6x1024xf32>
    %166 = arith.addf %164, %165 : vector<6x1024xf32>
    %c1_65 = arith.constant 1 : index
    %c0_66 = arith.constant 0 : index
    %c0_67 = arith.constant 0 : index
    %167 = vector.load %arg5[%c1_65, %c0_66, %c0_67] : memref<2x6x1024xf32, #tpu.memory_space<vmem>>, vector<1x6x1024xf32>
    %168 = vector.shape_cast %167 : vector<1x6x1024xf32> to vector<6x1024xf32>
    %169 = vector.shape_cast %166 : vector<6x1024xf32> to vector<1x6x1024xf32>
    tpu.vector_store %arg5[%c1_65, %c0_66, %c0_67], %169 {strides = array<i32>} : memref<2x6x1024xf32, #tpu.memory_space<vmem>>, vector<1x6x1024xf32>,
    return
  }
  func.func @transform_0(%arg0: i32) -> (i32, i32, i32) {
    %c0_i32 = arith.constant 0 : i32
    %c0_i32_0 = arith.constant 0 : i32
    %c0_i32_1 = arith.constant 0 : i32
    %c0_i32_2 = arith.constant 0 : i32
    return %c0_i32, %c0_i32_0, %c0_i32_1 : i32, i32, i32
  }
  func.func @transform_1(%arg0: i32) -> (i32, i32) {
    %c0_i32 = arith.constant 0 : i32
    %c0_i32_0 = arith.constant 0 : i32
    %c0_i32_1 = arith.constant 0 : i32
    return %c0_i32, %c0_i32_0 : i32, i32
  }
  func.func @transform_2(%arg0: i32) -> (i32, i32) {
    %c0_i32 = arith.constant 0 : i32
    %c0_i32_0 = arith.constant 0 : i32
    %c0_i32_1 = arith.constant 0 : i32
    return %c0_i32, %c0_i32_0 : i32, i32
  }
  func.func @transform_3(%arg0: i32) -> (i32, i32) {
    %c0_i32 = arith.constant 0 : i32
    %c0_i32_0 = arith.constant 0 : i32
    %c0_i32_1 = arith.constant 0 : i32
    return %c0_i32, %c0_i32_0 : i32, i32
  }
  func.func @transform_4(%arg0: i32) -> (i32, i32, i32) {
    %c0_i32 = arith.constant 0 : i32
    %c0_i32_0 = arith.constant 0 : i32
    %c0_i32_1 = arith.constant 0 : i32
    %c0_i32_2 = arith.constant 0 : i32
    return %c0_i32, %c0_i32_0, %c0_i32_1 : i32, i32, i32
  }
}

</mosaic_0001>

<bundles_post_ra>
// kernel: conv_gru_predictor.1
= control target key start
LH: loop header
LB: loop body
LE: loop exit
PB: predicated region body
PF: predicated region fallthrough
CT: control target
= control target key end

     0   :  { %v984_v4 = vmov 0.0   ;;  %vm26_vm0 = vcmask 1041409   ;;  %s985_s26 = smov 32   ;;  %s986_s27 = smov 64   ;;  %vm29_vm5 = vcmask 261120   ;;  %s1374_s1 = inlined_call_operand.vmem [shape: f32[32,128], index: 1, kind: input, shape index: {}]   ;;  %s1375_s0 = inlined_call_operand.vmem [shape: f32[2,6,128], index: 0, kind: input, shape index: {}]   ;;  %s1376_s2 = inlined_call_operand.vmem [shape: f32[32,1024], index: 2, kind: input, shape index: {}]   ;;  %s1377_s3 = inlined_call_operand.vmem [shape: f32[1,1024], index: 3, kind: input, shape index: {}]   ;;  %s1378_s4 = inlined_call_operand.vmem [shape: f32[2,6,1024], index: 4, kind: output, shape index: {}]  }
   0x1   :  { %v20_v0 = vld [vmem:[%s1374_s1 + $0x18] sm:$0xff]  ;;  %v19_v1 = vld [vmem:[%s1374_s1 + $0x10] sm:$0xff]  ;;  %v18_v2 = vld [vmem:[%s1374_s1 + $0x8] sm:$0xff]  ;;  %s987_s28 = smov 96  }
   0x2   :  { %45 = vmatpush.msra.mxu0 %v20_v0  ;;  %127 = vmatpush.msra.mxu1 %v20_v0  ;;  %v17_v3 = vld [vmem:[%s1374_s1] sm:$0xff]  ;;  %v22_v5 = vld [vmem:[%s1375_s0 + $0x8] sm:$0x1]  ;;  %v105_v35 = vld [vmem:[%s1375_s0 + $0x9] sm:$0x1] }
   0x3   :  { %208 = vmatpush.msra.mxu2 %v20_v0  ;;  %289 = vmatpush.msra.mxu3 %v20_v0  ;;  %v25_v6 = vrot.slane %v22_v5, 7  ;;  %v21_v7 = vld [vmem:[%s1375_s0] sm:$0x1]  ;;  %v110_v36 = vrot.slane %v105_v35, 7  ;;  %v104_v37 = vld [vmem:[%s1375_s0 + $0x1] sm:$0x1] }
   0x4   :  { %46 = vmatpush.msra.mxu0 %v19_v1  ;;  %128 = vmatpush.msra.mxu1 %v19_v1 }
   0x5   :  { %209 = vmatpush.msra.mxu2 %v19_v1  ;;  %290 = vmatpush.msra.mxu3 %v19_v1  ;;  %v27_v8 = vsel %vm26_vm0, %v25_v6, %v21_v7  ;;  %v111_v38 = vsel %vm26_vm0, %v110_v36, %v104_v37 }
   0x6   :  { %47 = vmatpush.msra.mxu0 %v18_v2  ;;  %129 = vmatpush.msra.mxu1 %v18_v2 }
   0x7   :  { %210 = vmatpush.msra.mxu2 %v18_v2  ;;  %291 = vmatpush.msra.mxu3 %v18_v2 }
   0x8   :  { %48 = vmatpush.msra.mxu0 %v17_v3  ;;  %130 = vmatpush.msra.mxu1 %v17_v3 }
   0x9   :  { %49 = vmatmul.f32.vlgmr.msra.gmra.mxu0 %v984_v4  ;;  %211 = vmatpush.msra.mxu2 %v17_v3 }
   0xa   :  { %292 = vmatpush.msra.mxu3 %v17_v3  ;;  %370 = vmatpush.msrb.mxu0 %v20_v0 }
   0xb   :  { %451 = vmatpush.msrb.mxu1 %v20_v0 }
   0xc   :  { %371 = vmatpush.msrb.mxu0 %v19_v1 }
   0xd   :  { %452 = vmatpush.msrb.mxu1 %v19_v1  ;;  %v186_v1 = vld [vmem:[%s1375_s0 + $0xa] sm:$0x1] }
   0xe   :  { %372 = vmatpush.msrb.mxu0 %v18_v2 }
   0xf   :  { %453 = vmatpush.msrb.mxu1 %v18_v2  ;;  %v191_v2 = vrot.slane %v186_v1, 7  ;;  %v347_v1 = vld [vmem:[%s1375_s0 + $0x4] sm:$0x1] }
  0x10   :  { %373 = vmatpush.msrb.mxu0 %v17_v3 }
  0x11   :  { %454 = vmatpush.msrb.mxu1 %v17_v3  ;;  %v185_v3 = vld [vmem:[%s1375_s0 + $0x2] sm:$0x1] }
  0x12   :  { %v192_v4 = vsel %vm26_vm0, %v191_v2, %v185_v3 }
  0x86   :  { %v50_v9 = vpop.f32.mrf.mxu0 }
  0x87   :  { %v51_v10 = vadd.f32 %v50_v9, %v27_v8 }
  0x89   :  { %73 = vrot.lane.b32.xlu0 %v51_v10, %s985_s26  ;;  %v909_v11 = vmul.f32 -1.442695, %v51_v10 }
  0x8b   :  { %948 = vpow2.f32 %v909_v11 }
  0x91   :  { %v949_v12 = vpop.eup %948 }
  0x92   :  { %v56_v13 = vadd.f32 1.0, %v949_v12 }
  0x94   :  { %950 = vrcp.f32 %v56_v13  ;;  %v68_v19 = vand.u32 2147483648, %v56_v13  ;;  %vm62_vm2 = vweird.f32 %v56_v13  ;;  %v66_v20 = vand.u32 2147483647, %v56_v13 }
  0x96   :  { %v69_v22 = vor.u32 1.1754944e-38, %v68_v19  ;;  %vm67_vm4 = vcmp.eq.f32.partialorder %v66_v20, 8.507059e+37 }
  0x9a   :  { %v951_v14 = vpop.eup %950 }
  0x9b   :  { %v58_v15 = vmul.f32 %v951_v14, %v56_v13  ;;  %vm63_vm1 = vweird.f32 %v951_v14 }
  0x9c   :  { %vm64_vm3 = vmor %vm62_vm2, %vm63_vm1 }
  0x9d   :  { %v59_v16 = vsub.f32 1.0, %v58_v15 }
  0x9f   :  { %v60_v17 = vmul.f32 %v951_v14, %v59_v16 }
  0xa1   :  { %v61_v18 = vadd.f32 %v951_v14, %v60_v17 }
  0xa3   :  { %v65_v21 = vsel %vm64_vm3, %v951_v14, %v61_v18 }
  0xa4   :  { %v70_v24 = vsel %vm67_vm4, %v69_v22, %v65_v21 }
  0xa5   :  { %v83_v29 = vsub.f32 1.0, %v70_v24  ;;  %v89_v31 = vmul.f32 0.0, %v70_v24 }
  0xfb   :  { %v74_v23 = vpop.permute.xlu0 %73 }
  0xfc   :  { %v76_v25 = vmul.f32 %v74_v23, %v70_v24 }
  0xfe   :  { %78 = vrot.lane.b32.xlu0 %v76_v25, %s986_s27 }
 0x170   :  { %v79_v26 = vpop.permute.xlu0 %78 }
 0x171   :  { %v81_v27 = vadd.f32 %v79_v26, %v51_v10 }
 0x173   :  { %952 = vtanh.f32 %v81_v27 }
 0x179   :  { %v953_v28 = vpop.eup %952 }
 0x17a   :  { %85 = vrot.lane.b32.xlu1 %v953_v28, %s987_s28 }
 0x1ec   :  { %v86_v30 = vpop.permute.xlu1 %85 }
 0x1ed   :  { %v88_v32 = vmul.f32 %v86_v30, %v83_v29 }
 0x1ef   :  { %v1035_v33 = vadd.f32 %v89_v31, %v88_v32  ;;  %v267_v31 = vld [vmem:[%s1375_s0 + $0xb] sm:$0x1] }
 0x1f0   :  { %v272_v32 = vrot.slane %v267_v31, 7 }
 0x1f1   :  { %106 = vrot.lane.b32.xlu1 %v1035_v33, %s987_s28 }
 0x263   :  { %v107_v34 = vpop.permute.xlu1 %106 }
 0x264   :  { %910 = vmatmul.msk.f32.vlgmr.msra.gmra.mxu1 %vm29_vm5, %v107_v34  ;;  %v266_v34 = vld [vmem:[%s1375_s0 + $0x3] sm:$0x1] }
 0x265   :  { %v273_v35 = vsel %vm26_vm0, %v272_v32, %v266_v34  ;;  %v428_v32 = vld [vmem:[%s1375_s0 + $0x5] sm:$0x1] }
 0x2e1   :  { %v132_v39 = vpop.f32.mrf.mxu1 }
 0x2e2   :  { %v133_v40 = vadd.f32 %v132_v39, %v111_v38 }
 0x2e4   :  { %155 = vrot.lane.b32.xlu2 %v133_v40, %s985_s26  ;;  %v911_v41 = vmul.f32 -1.442695, %v133_v40 }
 0x2e6   :  { %954 = vpow2.f32 %v911_v41 }
 0x2ec   :  { %v955_v42 = vpop.eup %954 }
 0x2ed   :  { %v138_v43 = vadd.f32 1.0, %v955_v42 }
 0x2ef   :  { %956 = vrcp.f32 %v138_v43  ;;  %v150_v49 = vand.u32 2147483648, %v138_v43  ;;  %vm144_vm7 = vweird.f32 %v138_v43  ;;  %v148_v50 = vand.u32 2147483647, %v138_v43 }
 0x2f1   :  { %v151_v52 = vor.u32 1.1754944e-38, %v150_v49  ;;  %vm149_vm9 = vcmp.eq.f32.partialorder %v148_v50, 8.507059e+37 }
 0x2f5   :  { %v957_v44 = vpop.eup %956 }
 0x2f6   :  { %v140_v45 = vmul.f32 %v957_v44, %v138_v43  ;;  %vm145_vm6 = vweird.f32 %v957_v44 }
 0x2f7   :  { %vm146_vm8 = vmor %vm144_vm7, %vm145_vm6 }
 0x2f8   :  { %v141_v46 = vsub.f32 1.0, %v140_v45 }
 0x2fa   :  { %v142_v47 = vmul.f32 %v957_v44, %v141_v46 }
 0x2fc   :  { %v143_v48 = vadd.f32 %v957_v44, %v142_v47 }
 0x2fe   :  { %v147_v51 = vsel %vm146_vm8, %v957_v44, %v143_v48 }
 0x2ff   :  { %v152_v54 = vsel %vm149_vm9, %v151_v52, %v147_v51 }
 0x300   :  { %v165_v59 = vsub.f32 1.0, %v152_v54  ;;  %v171_v61 = vmul.f32 %v152_v54, %v1035_v33 }
 0x33e   :  { %v156_v53 = vpop.permute.xlu2 %155 }
 0x33f   :  { %v158_v55 = vmul.f32 %v156_v53, %v152_v54 }
 0x341   :  { %160 = vrot.lane.b32.xlu2 %v158_v55, %s986_s27 }
 0x39b   :  { %v161_v56 = vpop.permute.xlu2 %160 }
 0x39c   :  { %v163_v57 = vadd.f32 %v161_v56, %v133_v40 }
 0x39e   :  { %958 = vtanh.f32 %v163_v57 }
 0x3a4   :  { %v959_v58 = vpop.eup %958 }
 0x3a5   :  { %167 = vrot.lane.b32.xlu0 %v959_v58, %s987_s28 }
 0x417   :  { %v168_v60 = vpop.permute.xlu0 %167 }
 0x418   :  { %v170_v62 = vmul.f32 %v168_v60, %v165_v59 }
 0x41a   :  { %v1051_v63 = vadd.f32 %v171_v61, %v170_v62  ;;  %v348_v62 = vld [vmem:[%s1375_s0 + $0xc] sm:$0x1] }
 0x41c   :  { %187 = vrot.lane.b32.xlu1 %v1051_v63, %s987_s28 }
 0x48e   :  { %v188_v0 = vpop.permute.xlu1 %187 }
 0x48f   :  { %912 = vmatmul.msk.f32.vlgmr.msra.gmra.mxu2 %vm29_vm5, %v188_v0  ;;  %v353_v0 = vrot.slane %v348_v62, 7 }
 0x491   :  { %v354_v2 = vsel %vm26_vm0, %v353_v0, %v347_v1 }
 0x512   :  { %v213_v5 = vpop.f32.mrf.mxu2 }
 0x513   :  { %v214_v6 = vadd.f32 %v213_v5, %v192_v4 }
 0x515   :  { %236 = vrot.lane.b32.xlu2 %v214_v6, %s985_s26  ;;  %v913_v7 = vmul.f32 -1.442695, %v214_v6 }
 0x517   :  { %960 = vpow2.f32 %v913_v7 }
 0x51d   :  { %v961_v8 = vpop.eup %960 }
 0x51e   :  { %v219_v9 = vadd.f32 1.0, %v961_v8 }
 0x520   :  { %962 = vrcp.f32 %v219_v9  ;;  %v231_v15 = vand.u32 2147483648, %v219_v9  ;;  %vm225_vm11 = vweird.f32 %v219_v9  ;;  %v229_v16 = vand.u32 2147483647, %v219_v9 }
 0x522   :  { %v232_v18 = vor.u32 1.1754944e-38, %v231_v15  ;;  %vm230_vm13 = vcmp.eq.f32.partialorder %v229_v16, 8.507059e+37 }
 0x526   :  { %v963_v10 = vpop.eup %962 }
 0x527   :  { %v221_v11 = vmul.f32 %v963_v10, %v219_v9  ;;  %vm226_vm10 = vweird.f32 %v963_v10 }
 0x528   :  { %vm227_vm12 = vmor %vm225_vm11, %vm226_vm10  ;;  %vm101_vm11 = vcmask 253952  }
 0x529   :  { %v222_v12 = vsub.f32 1.0, %v221_v11 }
 0x52b   :  { %v223_v13 = vmul.f32 %v963_v10, %v222_v12 }
 0x52d   :  { %v224_v14 = vadd.f32 %v963_v10, %v223_v13 }
 0x52f   :  { %v228_v17 = vsel %vm227_vm12, %v963_v10, %v224_v14 }
 0x530   :  { %v233_v20 = vsel %vm230_vm13, %v232_v18, %v228_v17 }
 0x531   :  { %v246_v25 = vsub.f32 1.0, %v233_v20  ;;  %v252_v27 = vmul.f32 %v233_v20, %v1051_v63 }
 0x56f   :  { %v237_v19 = vpop.permute.xlu2 %236 }
 0x570   :  { %v239_v21 = vmul.f32 %v237_v19, %v233_v20 }
 0x572   :  { %241 = vrot.lane.b32.xlu0 %v239_v21, %s986_s27 }
 0x5e4   :  { %v242_v22 = vpop.permute.xlu0 %241 }
 0x5e5   :  { %v244_v23 = vadd.f32 %v242_v22, %v214_v6 }
 0x5e7   :  { %964 = vtanh.f32 %v244_v23 }
 0x5ed   :  { %v965_v24 = vpop.eup %964 }
 0x5ee   :  { %248 = vrot.lane.b32.xlu1 %v965_v24, %s987_s28 }
 0x660   :  { %v249_v26 = vpop.permute.xlu1 %248 }
 0x661   :  { %v251_v28 = vmul.f32 %v249_v26, %v246_v25 }
 0x663   :  { %v1067_v29 = vadd.f32 %v252_v27, %v251_v28 }
 0x665   :  { %268 = vrot.lane.b32.xlu2 %v1067_v29, %s987_s28 }
 0x6bf   :  { %v269_v30 = vpop.permute.xlu2 %268 }
 0x6c0   :  { %914 = vmatmul.msk.f32.vlgmr.msra.gmra.mxu3 %vm29_vm5, %v269_v30  ;;  %v429_v30 = vld [vmem:[%s1375_s0 + $0xd] sm:$0x1] }
 0x6c1   :  { %v434_v31 = vrot.slane %v429_v30, 7  ;;  %v1187_v30 = vld [vmem:[%s1376_s2 + $0x40] sm:$0xff] }
 0x6c3   :  { %v435_v34 = vsel %vm26_vm0, %v434_v31, %v428_v32  ;;  %v1194_v31 = vld [vmem:[%s1376_s2 + $0x48] sm:$0xff]  ;;  %v1199_v32 = vld [vmem:[%s1376_s2 + $0x50] sm:$0xff] }
 0x743   :  { %v294_v36 = vpop.f32.mrf.mxu3 }
 0x744   :  { %v295_v37 = vadd.f32 %v294_v36, %v273_v35 }
 0x746   :  { %317 = vrot.lane.b32.xlu0 %v295_v37, %s985_s26  ;;  %v915_v38 = vmul.f32 -1.442695, %v295_v37 }
 0x748   :  { %966 = vpow2.f32 %v915_v38 }
 0x74e   :  { %v967_v39 = vpop.eup %966 }
 0x74f   :  { %v300_v40 = vadd.f32 1.0, %v967_v39  ;;  %v92_v39 = vrot.slane %v1035_v33, 1 }
 0x751   :  { %968 = vrcp.f32 %v300_v40  ;;  %v312_v46 = vand.u32 2147483648, %v300_v40  ;;  %vm306_vm15 = vweird.f32 %v300_v40  ;;  %v310_v47 = vand.u32 2147483647, %v300_v40 }
 0x753   :  { %v313_v49 = vor.u32 1.1754944e-38, %v312_v46  ;;  %vm311_vm2 = vcmp.eq.f32.partialorder %v310_v47, 8.507059e+37 }
 0x757   :  { %v969_v41 = vpop.eup %968 }
 0x758   :  { %v302_v42 = vmul.f32 %v969_v41, %v300_v40  ;;  %vm307_vm14 = vweird.f32 %v969_v41  ;;  %v94_v40 = vperm.slane %v92_v39, 0  ;;  %v537_v39 = vld [vmem:[%s1376_s2 + $0xe0] sm:$0xff] }
 0x759   :  { %vm308_vm1 = vmor %vm306_vm15, %vm307_vm14 }
 0x75a   :  { %v303_v43 = vsub.f32 1.0, %v302_v42 }
 0x75c   :  { %v304_v44 = vmul.f32 %v969_v41, %v303_v43 }
 0x75e   :  { %v305_v45 = vadd.f32 %v969_v41, %v304_v44 }
 0x760   :  { %v309_v48 = vsel %vm308_vm1, %v969_v41, %v305_v45 }
 0x761   :  { %v314_v51 = vsel %vm311_vm2, %v313_v49, %v309_v48 }
 0x762   :  { %v327_v56 = vsub.f32 1.0, %v314_v51  ;;  %v333_v58 = vmul.f32 %v314_v51, %v1067_v29 }
 0x7b8   :  { %v318_v50 = vpop.permute.xlu0 %317 }
 0x7b9   :  { %v320_v52 = vmul.f32 %v318_v50, %v314_v51 }
 0x7bb   :  { %322 = vrot.lane.b32.xlu1 %v320_v52, %s986_s27 }
 0x82d   :  { %v323_v53 = vpop.permute.xlu1 %322 }
 0x82e   :  { %v325_v54 = vadd.f32 %v323_v53, %v295_v37  ;;  %v93_v37 = vperm.slane %v1035_v33, 0 }
 0x830   :  { %970 = vtanh.f32 %v325_v54 }
 0x836   :  { %v971_v55 = vpop.eup %970 }
 0x837   :  { %329 = vrot.lane.b32.xlu2 %v971_v55, %s987_s28 }
 0x891   :  { %v330_v57 = vpop.permute.xlu2 %329 }
 0x892   :  { %v332_v59 = vmul.f32 %v330_v57, %v327_v56 }
 0x894   :  { %v334_v60 = vadd.f32 %v333_v58, %v332_v59  ;;  %v175_v58 = vperm.slane %v1051_v63, 0 }
 0x896   :  { %349 = vrot.lane.b32.xlu0 %v334_v60, %s987_s28  ;;  %v337_v38 = vperm.slane %v334_v60, 0  ;;  %v336_v41 = vrot.slane %v334_v60, 1 }
 0x898   :  { %v338_v42 = vperm.slane %v336_v41, 0  ;;  %v539_v41 = vld [vmem:[%s1376_s2 + $0xf0] sm:$0xff] }
 0x908   :  { %v350_v61 = vpop.permute.xlu0 %349 }
 0x909   :  { %916 = vmatmul.msk.f32.vlgmr.msrb.gmra.mxu0 %vm29_vm5, %v350_v61  ;;  %v174_v61 = vrot.slane %v1051_v63, 1 }
 0x90b   :  { %v176_v0 = vperm.slane %v174_v61, 0 }
 0x986   :  { %v375_v3 = vpop.f32.mrf.mxu0 }
 0x987   :  { %v376_v4 = vadd.f32 %v375_v3, %v354_v2 }
 0x989   :  { %398 = vrot.lane.b32.xlu1 %v376_v4, %s985_s26  ;;  %v917_v5 = vmul.f32 -1.442695, %v376_v4 }
 0x98b   :  { %972 = vpow2.f32 %v917_v5 }
 0x991   :  { %v973_v6 = vpop.eup %972 }
 0x992   :  { %v381_v7 = vadd.f32 1.0, %v973_v6 }
 0x994   :  { %974 = vrcp.f32 %v381_v7  ;;  %v393_v13 = vand.u32 2147483648, %v381_v7  ;;  %vm387_vm4 = vweird.f32 %v381_v7  ;;  %v391_v14 = vand.u32 2147483647, %v381_v7 }
 0x996   :  { %v394_v16 = vor.u32 1.1754944e-38, %v393_v13  ;;  %vm392_vm7 = vcmp.eq.f32.partialorder %v391_v14, 8.507059e+37 }
 0x99a   :  { %v975_v8 = vpop.eup %974 }
 0x99b   :  { %v383_v9 = vmul.f32 %v975_v8, %v381_v7  ;;  %vm388_vm3 = vweird.f32 %v975_v8 }
 0x99c   :  { %vm389_vm6 = vmor %vm387_vm4, %vm388_vm3 }
 0x99d   :  { %v384_v10 = vsub.f32 1.0, %v383_v9 }
 0x99f   :  { %v385_v11 = vmul.f32 %v975_v8, %v384_v10 }
 0x9a1   :  { %v386_v12 = vadd.f32 %v975_v8, %v385_v11 }
 0x9a3   :  { %v390_v15 = vsel %vm389_vm6, %v975_v8, %v386_v12  ;;  %v256_v8 = vperm.slane %v1067_v29, 0 }
 0x9a4   :  { %v395_v18 = vsel %vm392_vm7, %v394_v16, %v390_v15 }
 0x9a5   :  { %v408_v23 = vsub.f32 1.0, %v395_v18  ;;  %v414_v25 = vmul.f32 %v395_v18, %v334_v60 }
 0x9fb   :  { %v399_v17 = vpop.permute.xlu1 %398 }
 0x9fc   :  { %v401_v19 = vmul.f32 %v399_v17, %v395_v18  ;;  %v255_v18 = vrot.slane %v1067_v29, 1  ;;  %v1153_v29 = vld [vmem:[%s1376_s2 + $0xd0] sm:$0xff] }
 0x9fd   :  { %615 = vmatpush.msra.mxu0 %v1153_v29 }
 0x9fe   :  { %403 = vrot.lane.b32.xlu2 %v401_v19, %s986_s27  ;;  %v257_v19 = vperm.slane %v255_v18, 0 }
 0xa58   :  { %v404_v20 = vpop.permute.xlu2 %403 }
 0xa59   :  { %v406_v21 = vadd.f32 %v404_v20, %v376_v4 }
 0xa5b   :  { %976 = vtanh.f32 %v406_v21 }
 0xa61   :  { %v977_v22 = vpop.eup %976 }
 0xa62   :  { %410 = vrot.lane.b32.xlu0 %v977_v22, %s987_s28  ;;  %v1143_v22 = vld [vmem:[%s1376_s2 + $0xc0] sm:$0xff] }
 0xa63   :  { %575 = vmatpush.msrb.mxu2 %v1143_v22 }
 0xad4   :  { %v411_v24 = vpop.permute.xlu0 %410 }
 0xad5   :  { %v413_v26 = vmul.f32 %v411_v24, %v408_v23  ;;  %v1148_v23 = vld [vmem:[%s1376_s2 + $0xc8] sm:$0xff]  ;;  %v1160_v24 = vld [vmem:[%s1376_s2 + $0xd8] sm:$0xff] }
 0xad6   :  { %595 = vmatpush.msrb.mxu3 %v1148_v23  ;;  %635 = vmatpush.msra.mxu1 %v1160_v24 }
 0xad7   :  { %v1095_v27 = vadd.f32 %v414_v25, %v413_v26  ;;  %v1165_v25 = vld [vmem:[%s1376_s2 + $0x80] sm:$0xff]  ;;  %v1170_v26 = vld [vmem:[%s1376_s2 + $0x88] sm:$0xff] }
 0xad8   :  { %576 = vmatpush.msrb.mxu2 %v1165_v25  ;;  %596 = vmatpush.msrb.mxu3 %v1170_v26 }
 0xad9   :  { %430 = vrot.lane.b32.xlu1 %v1095_v27, %s987_s28  ;;  %v418_v60 = vperm.slane %v1095_v27, 0  ;;  %v417_v1 = vrot.slane %v1095_v27, 1 }
 0xada   :  { %577 = vmatpush.msrb.mxu2 %v1187_v30  ;;  %597 = vmatpush.msrb.mxu3 %v1194_v31 }
 0xadb   :  { %v419_v3 = vperm.slane %v417_v1, 0 }
 0xb4b   :  { %v431_v28 = vpop.permute.xlu1 %430 }
 0xb4c   :  { %918 = vmatmul.msk.f32.vlgmr.msrb.gmra.mxu1 %vm29_vm5, %v431_v28  ;;  %v1182_v28 = vld [vmem:[%s1376_s2 + $0x98] sm:$0xff] }
 0xb4d   :  { %636 = vmatpush.msra.mxu1 %v1182_v28 }
 0xbc9   :  { %v456_v35 = vpop.f32.mrf.mxu1 }
 0xbca   :  { %v457_v36 = vadd.f32 %v456_v35, %v435_v34  ;;  %v1204_v34 = vld [vmem:[%s1376_s2 + $0x58] sm:$0xff]  ;;  %v1211_v35 = vld [vmem:[%s1376_s2] sm:$0xff] }
 0xbcb   :  { %637 = vmatpush.msra.mxu1 %v1204_v34  ;;  %578 = vmatpush.msrb.mxu2 %v1211_v35 }
 0xbcc   :  { %479 = vrot.lane.b32.xlu2 %v457_v36, %s985_s26  ;;  %v919_v43 = vmul.f32 -1.442695, %v457_v36 }
 0xbcd   :  { %655 = vmatpush.msra.mxu2 %v537_v39 }
 0xbce   :  { %978 = vpow2.f32 %v919_v43  ;;  %v529_v43 = vld [vmem:[%s1376_s2 + $0xa0] sm:$0xff] }
 0xbcf   :  { %656 = vmatpush.msra.mxu2 %v529_v43 }
 0xbd4   :  { %95 = vrot.lane.b32.xlu2 %v93_v37, %s987_s28  ;;  %v979_v44 = vpop.eup %978  ;;  %v1223_v37 = vld [vmem:[%s1376_s2 + $0x10] sm:$0xff] }
 0xbd5   :  { %v462_v45 = vadd.f32 1.0, %v979_v44  ;;  %v530_v44 = vld [vmem:[%s1376_s2 + $0xa8] sm:$0xff] }
 0xbd7   :  { %980 = vrcp.f32 %v462_v45  ;;  %v474_v51 = vand.u32 2147483648, %v462_v45  ;;  %vm468_vm8 = vweird.f32 %v462_v45  ;;  %v472_v33 = vand.u32 2147483647, %v462_v45 }
 0xbd9   :  { %v475_v53 = vor.u32 1.1754944e-38, %v474_v51  ;;  %vm473_vm10 = vcmp.eq.f32.partialorder %v472_v33, 8.507059e+37  ;;  %v513_v51 = vld [vmem:[%s1376_s2 + $0x20] sm:$0xff]  ;;  %v514_v33 = vld [vmem:[%s1376_s2 + $0x28] sm:$0xff] }
 0xbdc   :  { %339 = vrot.lane.b32.xlu2 %v337_v38, %s987_s28  ;;  %v1228_v38 = vld [vmem:[%s1376_s2 + $0x18] sm:$0xff] }
 0xbdd   :  { %v981_v46 = vpop.eup %980  ;;  %638 = vmatpush.msra.mxu1 %v1228_v38 }
 0xbde   :  { %v464_v47 = vmul.f32 %v981_v46, %v462_v45  ;;  %vm469_vm0 = vweird.f32 %v981_v46  ;;  %v531_v45 = vld [vmem:[%s1376_s2 + $0xb0] sm:$0xff] }
 0xbdf   :  { %vm470_vm9 = vmor %vm468_vm8, %vm469_vm0 }
 0xbe0   :  { %v465_v48 = vsub.f32 1.0, %v464_v47  ;;  %v1263_v47 = vld [vmem:[%s1376_s2 + $0x60] sm:$0xff] }
 0xbe1   :  { %657 = vmatpush.msra.mxu2 %v1263_v47 }
 0xbe2   :  { %v466_v49 = vmul.f32 %v981_v46, %v465_v48  ;;  %v522_v48 = vld [vmem:[%s1376_s2 + $0x68] sm:$0xff] }
 0xbe3   :  { %658 = vmatpush.msra.mxu2 %v513_v51 }
 0xbe4   :  { %97 = vrot.lane.b32.xlu2 %v94_v40, %s987_s28  ;;  %v467_v50 = vadd.f32 %v981_v46, %v466_v49  ;;  %v538_v40 = vld [vmem:[%s1376_s2 + $0xe8] sm:$0xff]  ;;  %v523_v49 = vld [vmem:[%s1376_s2 + $0x70] sm:$0xff] }
 0xbe6   :  { %v471_v52 = vsel %vm470_vm9, %v981_v46, %v467_v50  ;;  %v532_v46 = vld [vmem:[%s1376_s2 + $0xb8] sm:$0xff] }
 0xbe7   :  { %v476_v55 = vsel %vm473_vm10, %v475_v53, %v471_v52  ;;  %v524_v50 = vld [vmem:[%s1376_s2 + $0x78] sm:$0xff]  ;;  %v515_v52 = vld [vmem:[%s1376_s2 + $0x30] sm:$0xff] }
 0xbe8   :  { %v489_v11 = vsub.f32 1.0, %v476_v55  ;;  %v495_v13 = vmul.f32 %v476_v55, %v1095_v27  ;;  %v1177_v27 = vld [vmem:[%s1376_s2 + $0x90] sm:$0xff]  ;;  %v516_v53 = vld [vmem:[%s1376_s2 + $0x38] sm:$0xff] }
 0xbe9   :  { %616 = vmatpush.msra.mxu0 %v1177_v27 }
 0xbeb   :  { %617 = vmatpush.msra.mxu0 %v1199_v32 }
 0xbec   :  { %341 = vrot.lane.b32.xlu2 %v338_v42, %s987_s28  ;;  %v540_v42 = vld [vmem:[%s1376_s2 + $0xf8] sm:$0xff] }
 0xbed   :  { %618 = vmatpush.msra.mxu0 %v1223_v37  ;;  %715 = vmatpush.msrb.mxu1 %v540_v42 }
 0xbef   :  { %695 = vmatpush.msrb.mxu0 %v539_v41  ;;  %716 = vmatpush.msrb.mxu1 %v532_v46 }
 0xbf1   :  { %696 = vmatpush.msrb.mxu0 %v531_v45  ;;  %717 = vmatpush.msrb.mxu1 %v524_v50 }
 0xbf3   :  { %697 = vmatpush.msrb.mxu0 %v523_v49  ;;  %718 = vmatpush.msrb.mxu1 %v516_v53 }
 0xbf5   :  { %698 = vmatpush.msrb.mxu0 %v515_v52 }
 0xc26   :  { %v480_v54 = vpop.permute.xlu2 %479 }
 0xc27   :  { %v482_v56 = vmul.f32 %v480_v54, %v476_v55 }
 0xc29   :  { %484 = vrot.lane.b32.xlu0 %v482_v56, %s986_s27 }
 0xc2e   :  { %v96_v57 = vpop.permute.xlu2 %95 }
 0xc2f   :  { %102 = vst.msk [vmem:[#allocation2] sm:$0x1] %vm101_vm11, %v96_v57 }
 0xc31   :  { %177 = vrot.lane.b32.xlu0 %v175_v58, %s987_s28 }
 0xc36   :  { %v340_v59 = vpop.permute.xlu2 %339 }
 0xc37   :  { %345 = vst.msk [vmem:[#allocation2 + $0x3] sm:$0x1] %vm101_vm11, %v340_v59  ;;  %v541_v59 = vld [vmem:[%s1377_s3] sm:$0xff] }
 0xc38   :  { %v547_v61 = vperm.slane %v541_v59, 3 }
 0xc39   :  { %420 = vrot.lane.b32.xlu0 %v418_v60, %s987_s28  ;;  %v546_v60 = vperm.slane %v541_v59, 2 }
 0xc3e   :  { %v98_v62 = vpop.permute.xlu2 %97 }
 0xc3f   :  { %103 = vst.msk [vmem:[#allocation2 + $0x8] sm:$0x1] %vm101_vm11, %v98_v62 }
 0xc41   :  { %179 = vrot.lane.b32.xlu0 %v176_v0, %s987_s28 }
 0xc46   :  { %v342_v2 = vpop.permute.xlu2 %341 }
 0xc47   :  { %346 = vst.msk [vmem:[#allocation2 + $0xb] sm:$0x1] %vm101_vm11, %v342_v2 }
 0xc49   :  { %422 = vrot.lane.b32.xlu0 %v419_v3, %s987_s28  ;;  %v544_v3 = vperm.slane %v541_v59, 0 }
 0xc9b   :  { %v485_v4 = vpop.permute.xlu0 %484 }
 0xc9c   :  { %v487_v5 = vadd.f32 %v485_v4, %v457_v36  ;;  %v1216_v36 = vld [vmem:[%s1376_s2 + $0x8] sm:$0xff]  ;;  %v545_v4 = vperm.slane %v541_v59, 1 }
 0xc9d   :  { %598 = vmatpush.msrb.mxu3 %v1216_v36 }
 0xc9e   :  { %982 = vtanh.f32 %v487_v5 }
 0xc9f   :  { %675 = vmatpush.msra.mxu3 %v538_v40 }
 0xca1   :  { %676 = vmatpush.msra.mxu3 %v530_v44 }
 0xca3   :  { %v178_v6 = vpop.permute.xlu0 %177  ;;  %677 = vmatpush.msra.mxu3 %v522_v48 }
 0xca4   :  { %v983_v7 = vpop.eup %982  ;;  %183 = vst.msk [vmem:[#allocation2 + $0x1] sm:$0x1] %vm101_vm11, %v178_v6 }
 0xca5   :  { %491 = vrot.lane.b32.xlu1 %v983_v7, %s987_s28  ;;  %678 = vmatpush.msra.mxu3 %v514_v33  ;;  %v550_v7 = vperm.slane %v541_v59, 6 }
 0xcab   :  { %v421_v63 = vpop.permute.xlu0 %420 }
 0xcac   :  { %426 = vst.msk [vmem:[#allocation2 + $0x4] sm:$0x1] %vm101_vm11, %v421_v63  ;;  %v551_v63 = vperm.slane %v541_v59, 7 }
 0xcad   :  { %258 = vrot.lane.b32.xlu1 %v256_v8, %s987_s28 }
 0xcb3   :  { %v180_v9 = vpop.permute.xlu0 %179 }
 0xcb4   :  { %184 = vst.msk [vmem:[#allocation2 + $0x9] sm:$0x1] %vm101_vm11, %v180_v9 }
 0xcbb   :  { %v423_v10 = vpop.permute.xlu0 %422 }
 0xcbc   :  { %427 = vst.msk [vmem:[#allocation2 + $0xc] sm:$0x1] %vm101_vm11, %v423_v10 }
 0xd17   :  { %v492_v12 = vpop.permute.xlu1 %491 }
 0xd18   :  { %v494_v14 = vmul.f32 %v492_v12, %v489_v11 }
 0xd1a   :  { %v496_v15 = vadd.f32 %v495_v13, %v494_v14  ;;  %v548_v14 = vperm.slane %v541_v59, 4 }
 0xd1c   :  { %v499_v16 = vperm.slane %v496_v15, 0  ;;  %v498_v20 = vrot.slane %v496_v15, 1  ;;  %v549_v15 = vperm.slane %v541_v59, 5 }
 0xd1e   :  { %501 = vrot.lane.b32.xlu1 %v499_v16, %s987_s28  ;;  %v500_v21 = vperm.slane %v498_v20, 0 }
 0xd1f   :  { %v259_v17 = vpop.permute.xlu1 %258 }
 0xd20   :  { %264 = vst.msk [vmem:[#allocation2 + $0x2] sm:$0x1] %vm101_vm11, %v259_v17 }
 0xd26   :  { %260 = vrot.lane.b32.xlu1 %v257_v19, %s987_s28 }
 0xd2e   :  { %503 = vrot.lane.b32.xlu1 %v500_v21, %s987_s28 }
 0xd90   :  { %v502_v54 = vpop.permute.xlu1 %501 }
 0xd91   :  { %507 = vst.msk [vmem:[#allocation2 + $0x5] sm:$0x1] %vm101_vm11, %v502_v54 }
 0xd98   :  { %v261_v55 = vpop.permute.xlu1 %260  ;;  %v542_v56 = vld [vmem:[#allocation2] sm:$0x3f] }
 0xd99   :  { %265 = vst.msk [vmem:[#allocation2 + $0xa] sm:$0x1] %vm101_vm11, %v261_v55  ;;  %920 = vmatmul.msk.f32.vlgmr.msrb.gmra.mxu2 %vm29_vm5, %v542_v56  ;;  %921 = vmatmul.msk.f32.vlgmr.msrb.gmra.mxu3 %vm29_vm5, %v542_v56 }
 0xd9a   :  { %922 = vmatmul.msk.f32.vlgmr.msra.gmra.mxu0 %vm29_vm5, %v542_v56  ;;  %923 = vmatmul.msk.f32.vlgmr.msra.gmra.mxu1 %vm29_vm5, %v542_v56 }
 0xd9b   :  { %748 = vmatpush.msrb.mxu2 %v1143_v22  ;;  %768 = vmatpush.msrb.mxu3 %v1148_v23 }
 0xd9c   :  { %788 = vmatpush.msra.mxu0 %v1153_v29  ;;  %808 = vmatpush.msra.mxu1 %v1160_v24 }
 0xd9d   :  { %749 = vmatpush.msrb.mxu2 %v1165_v25  ;;  %769 = vmatpush.msrb.mxu3 %v1170_v26 }
 0xd9e   :  { %789 = vmatpush.msra.mxu0 %v1177_v27  ;;  %809 = vmatpush.msra.mxu1 %v1182_v28 }
 0xd9f   :  { %750 = vmatpush.msrb.mxu2 %v1187_v30  ;;  %770 = vmatpush.msrb.mxu3 %v1194_v31 }
 0xda0   :  { %v504_v57 = vpop.permute.xlu1 %503  ;;  %790 = vmatpush.msra.mxu0 %v1199_v32  ;;  %810 = vmatpush.msra.mxu1 %v1204_v34 }
 0xda1   :  { %508 = vst.msk [vmem:[#allocation2 + $0xd] sm:$0x1] %vm101_vm11, %v504_v57  ;;  %924 = vmatmul.msk.f32.vlgmr.msra.gmra.mxu2 %vm29_vm5, %v542_v56  ;;  %925 = vmatmul.msk.f32.vlgmr.msra.gmra.mxu3 %vm29_vm5, %v542_v56 }
 0xda2   :  { %926 = vmatmul.msk.f32.vlgmr.msrb.gmra.mxu0 %vm29_vm5, %v542_v56  ;;  %927 = vmatmul.msk.f32.vlgmr.msrb.gmra.mxu1 %vm29_vm5, %v542_v56 }
 0xda3   :  { %751 = vmatpush.msrb.mxu2 %v1211_v35  ;;  %771 = vmatpush.msrb.mxu3 %v1216_v36 }
 0xda4   :  { %791 = vmatpush.msra.mxu0 %v1223_v37  ;;  %811 = vmatpush.msra.mxu1 %v1228_v38 }
 0xda5   :  { %828 = vmatpush.msra.mxu2 %v537_v39  ;;  %848 = vmatpush.msra.mxu3 %v538_v40 }
 0xda6   :  { %868 = vmatpush.msrb.mxu0 %v539_v41  ;;  %888 = vmatpush.msrb.mxu1 %v540_v42 }
 0xda7   :  { %829 = vmatpush.msra.mxu2 %v529_v43  ;;  %849 = vmatpush.msra.mxu3 %v530_v44 }
 0xda8   :  { %v732_v58 = vld [vmem:[#allocation2 + $0x8] sm:$0x3f]  ;;  %869 = vmatpush.msrb.mxu0 %v531_v45  ;;  %889 = vmatpush.msrb.mxu1 %v532_v46 }
 0xda9   :  { %928 = vmatmul.msk.f32.vlgmr.msrb.gmra.mxu2 %vm29_vm5, %v732_v58  ;;  %929 = vmatmul.msk.f32.vlgmr.msrb.gmra.mxu3 %vm29_vm5, %v732_v58 }
 0xdaa   :  { %930 = vmatmul.msk.f32.vlgmr.msra.gmra.mxu0 %vm29_vm5, %v732_v58  ;;  %931 = vmatmul.msk.f32.vlgmr.msra.gmra.mxu1 %vm29_vm5, %v732_v58 }
 0xdab   :  { %830 = vmatpush.msra.mxu2 %v1263_v47  ;;  %850 = vmatpush.msra.mxu3 %v522_v48 }
 0xdac   :  { %870 = vmatpush.msrb.mxu0 %v523_v49  ;;  %890 = vmatpush.msrb.mxu1 %v524_v50 }
 0xdad   :  { %831 = vmatpush.msra.mxu2 %v513_v51  ;;  %851 = vmatpush.msra.mxu3 %v514_v33 }
 0xdae   :  { %871 = vmatpush.msrb.mxu0 %v515_v52  ;;  %891 = vmatpush.msrb.mxu1 %v516_v53 }
 0xdb1   :  { %932 = vmatmul.msk.f32.vlgmr.msra.gmra.mxu2 %vm29_vm5, %v732_v58  ;;  %933 = vmatmul.msk.f32.vlgmr.msra.gmra.mxu3 %vm29_vm5, %v732_v58 }
 0xdb2   :  { %934 = vmatmul.msk.f32.vlgmr.msrb.gmra.mxu0 %vm29_vm5, %v732_v58  ;;  %935 = vmatmul.msk.f32.vlgmr.msrb.gmra.mxu1 %vm29_vm5, %v732_v58 }
 0xe17   :  { %v620_v62 = vpop.f32.mrf.mxu0  ;;  %v640_v0 = vpop.f32.mrf.mxu1 }
 0xe18   :  { %v621_v1 = vadd.f32 %v620_v62, %v546_v60  ;;  %v641_v2 = vadd.f32 %v640_v0, %v547_v61 }
 0xe1a   :  { %725 = vst [vmem:[%s1378_s4 + $0x10] sm:$0x3f] %v621_v1 }
 0xe1b   :  { %726 = vst [vmem:[%s1378_s4 + $0x18] sm:$0x3f] %v641_v2 }
 0xe1c   :  { %v580_v5 = vpop.f32.mrf.mxu2  ;;  %v600_v6 = vpop.f32.mrf.mxu3 }
 0xe1d   :  { %v581_v8 = vadd.f32 %v580_v5, %v544_v3  ;;  %v601_v9 = vadd.f32 %v600_v6, %v545_v4 }
 0xe1f   :  { %723 = vst [vmem:[%s1378_s4] sm:$0x3f] %v581_v8  ;;  %v700_v10 = vpop.f32.mrf.mxu0  ;;  %v720_v11 = vpop.f32.mrf.mxu1 }
 0xe20   :  { %724 = vst [vmem:[%s1378_s4 + $0x8] sm:$0x3f] %v601_v9  ;;  %v701_v12 = vadd.f32 %v700_v10, %v550_v7  ;;  %v721_v13 = vadd.f32 %v720_v11, %v551_v63 }
 0xe22   :  { %729 = vst [vmem:[%s1378_s4 + $0x30] sm:$0x3f] %v701_v12 }
 0xe23   :  { %730 = vst [vmem:[%s1378_s4 + $0x38] sm:$0x3f] %v721_v13 }
 0xe24   :  { %v660_v16 = vpop.f32.mrf.mxu2  ;;  %v680_v17 = vpop.f32.mrf.mxu3 }
 0xe25   :  { %v661_v18 = vadd.f32 %v660_v16, %v548_v14  ;;  %v681_v19 = vadd.f32 %v680_v17, %v549_v15 }
 0xe27   :  { %727 = vst [vmem:[%s1378_s4 + $0x20] sm:$0x3f] %v661_v18  ;;  %v793_v20 = vpop.f32.mrf.mxu0  ;;  %v813_v21 = vpop.f32.mrf.mxu1 }
 0xe28   :  { %728 = vst [vmem:[%s1378_s4 + $0x28] sm:$0x3f] %v681_v19  ;;  %v794_v22 = vadd.f32 %v793_v20, %v546_v60  ;;  %v814_v23 = vadd.f32 %v813_v21, %v547_v61 }
 0xe2a   :  { %938 = vst [vmem:[%s1378_s4 + $0x50] sm:$0x3f] %v794_v22 }
 0xe2b   :  { %939 = vst [vmem:[%s1378_s4 + $0x58] sm:$0x3f] %v814_v23 }
 0xe2c   :  { %v753_v29 = vpop.f32.mrf.mxu2  ;;  %v773_v24 = vpop.f32.mrf.mxu3 }
 0xe2d   :  { %v754_v25 = vadd.f32 %v753_v29, %v544_v3  ;;  %v774_v26 = vadd.f32 %v773_v24, %v545_v4 }
 0xe2f   :  { %936 = vst [vmem:[%s1378_s4 + $0x40] sm:$0x3f] %v754_v25  ;;  %v873_v27 = vpop.f32.mrf.mxu0  ;;  %v893_v28 = vpop.f32.mrf.mxu1 }
 0xe30   :  { %937 = vst [vmem:[%s1378_s4 + $0x48] sm:$0x3f] %v774_v26  ;;  %v874_v30 = vadd.f32 %v873_v27, %v550_v7  ;;  %v894_v31 = vadd.f32 %v893_v28, %v551_v63 }
 0xe32   :  { %942 = vst [vmem:[%s1378_s4 + $0x70] sm:$0x3f] %v874_v30 }
 0xe33   :  { %943 = vst [vmem:[%s1378_s4 + $0x78] sm:$0x3f] %v894_v31 }
 0xe34   :  { %v833_v32 = vpop.f32.mrf.mxu2  ;;  %v853_v34 = vpop.f32.mrf.mxu3 }
 0xe35   :  { %v834_v35 = vadd.f32 %v833_v32, %v548_v14  ;;  %v854_v36 = vadd.f32 %v853_v34, %v549_v15 }
 0xe37   :  { %940 = vst [vmem:[%s1378_s4 + $0x60] sm:$0x3f] %v834_v35 }
 0xe38   :  { %941 = vst [vmem:[%s1378_s4 + $0x68] sm:$0x3f] %v854_v36 }

</bundles_post_ra>
